<compile_context>
chip_gen: v6e
topology: v6e:2x2x1
jax: 0.10.0
libtpu: 0.0.40
codegen_flags: <defaults>
</compile_context>

<pallas_src>
import jax
import jax.numpy as jnp
from jax.experimental import pallas as pl
from jax.experimental.pallas import tpu as pltpu

BN_EPS = 1e-5
_LANE = 128
_SUBLANE = 8
_VMEM_BUDGET = 40 * 1024 * 1024   # resident double-buffered footprint cap (v7x-safe)


def _round_up(a, b):
    return (a + b - 1) // b * b


def _dense_kernel(x_ref, w_ref, b_ref, out_ref):
    # x_ref:   (tm, C*H, W) VMEM  -- raw NCHW input tile (C,H flattened; W last)
    # w_ref:   (C*H, K_pad) VMEM  -- Linear weight with BN scale and 1/W folded in
    # b_ref:   (1, K_pad)   VMEM  -- Linear bias with BN shift folded in
    # out_ref: (tm, K_pad)  VMEM
    pooled = jnp.sum(x_ref[...], axis=-1)            # avg-pool over W (1/W is in w_ref)
    out_ref[...] = (
        jnp.dot(pooled, w_ref[...], preferred_element_type=jnp.float32)
        + b_ref[...]
    )


def _vmem_bytes(tm, ch, w, k_pad):
    # Double-buffered x / weight / bias / out, accounting for (8,128) layout padding.
    x_buf = tm * _round_up(ch, _SUBLANE) * _round_up(w, _LANE) * 4
    w_buf = _round_up(ch, _SUBLANE) * k_pad * 4
    b_buf = _SUBLANE * k_pad * 4
    o_buf = _round_up(tm, _SUBLANE) * k_pad * 4
    return 2 * (x_buf + w_buf + b_buf + o_buf)


def densemodule_forward(x, gamma, beta, running_mean, running_var, w_chk, bias,
                        *, block_n=256):
    """Eval-mode forward of `densemodule`.

    x:      (N, C, H, W) float32  (NCHW, same layout as the PyTorch module)
    w_chk:  (C, H, K)    float32  nn.Linear weight, transposed + reshaped
    bias:   (K,)         float32
    returns (N, K) float32
    """
    n, c, h, w = x.shape
    k = w_chk.shape[-1]
    ch = c * h
    k_pad = _round_up(k, _LANE)

    # ---- fold BN (eval) + 1/W avg-pool into the Linear weight / bias (wrapper side) ----
    scale = gamma / jnp.sqrt(running_var + BN_EPS)                       # (C,)
    shift = beta - running_mean * scale                                  # (C,)
    w_folded = ((scale[:, None, None] * w_chk) / float(w)).reshape(ch, k)  # (C*H, K)
    b_folded = bias + jnp.einsum('c,chk->k', shift, w_chk)               # (K,)
    if k_pad != k:
        w_folded = jnp.pad(w_folded, ((0, 0), (0, k_pad - k)))
        b_folded = jnp.pad(b_folded, (0, k_pad - k))
    b_folded = b_folded.reshape(1, k_pad)

    # ---- layout: (N, C*H, W) is a contiguous view of NCHW; no HBM copy of x ----
    x3 = x.reshape(n, ch, w)

    # ---- batch tiling ----
    if n <= _SUBLANE:
        tm = n                                       # single block (block == array dims)
    elif n <= block_n:
        tm = _round_up(pl.cdiv(n, 2), _SUBLANE)      # >=2 parallel steps (v7x dual-TC)
    else:
        tm = _round_up(block_n, _SUBLANE)
    # Shrink tm until the (lane-padded) resident VMEM footprint fits the budget.
    while tm > _SUBLANE and _vmem_bytes(tm, ch, w, k_pad) > _VMEM_BUDGET:
        tm = _round_up(max(_SUBLANE, tm // 2), _SUBLANE)
    grid = (pl.cdiv(n, tm),)   # ragged last block is masked on write; no jnp.pad copy

    vmem_limit = int(min(96 * 1024 * 1024,
                         max(16 * 1024 * 1024,
                             _vmem_bytes(tm, ch, w, k_pad) + (4 << 20))))

    out = pl.pallas_call(
        _dense_kernel,
        out_shape=jax.ShapeDtypeStruct((n, k_pad), jnp.float32),
        grid=grid,
        in_specs=[
            pl.BlockSpec((tm, ch, w), lambda i: (i, 0, 0)),   # x tile streamed over batch
            pl.BlockSpec((ch, k_pad), lambda i: (0, 0)),      # folded weight, resident
            pl.BlockSpec((1, k_pad), lambda i: (0, 0)),       # folded bias, resident
        ],
        out_specs=pl.BlockSpec((tm, k_pad), lambda i: (i, 0)),
        compiler_params=pltpu.CompilerParams(
            dimension_semantics=("parallel",),
            vmem_limit_bytes=vmem_limit,
        ),
    )(x3, w_folded, b_folded)

    return out[:, :k]


def _reference(x, gamma, beta, running_mean, running_var, w_chk, bias):
    # Plain-JAX reference of the same eval-mode forward.
    pooled = jnp.mean(x, axis=-1)                                        # (N, C, H)
    scale = gamma / jnp.sqrt(running_var + BN_EPS)
    bn = (pooled - running_mean[None, :, None]) * scale[None, :, None] + beta[None, :, None]
    flat = bn.reshape(x.shape[0], -1)                                    # (N, C*H)
    w2d = w_chk.reshape(-1, w_chk.shape[-1])                             # (C*H, K)
    return flat @ w2d + bias[None, :]


if __name__ == "__main__":
    # Small shapes consistent with the module:
    # N=2, n_ch_in=4, input_height=16, input_len=16, n_classes=8
    N, C, H, W, K = 2, 4, 16, 16, 8

    key = jax.random.PRNGKey(0)
    kx, kg, kb, km, kv, kw, kbias = jax.random.split(key, 7)

    x = jax.random.normal(kx, (N, C, H, W), dtype=jnp.float32)

    # Deterministic synthetic parameters (BatchNorm affine + running stats, Linear weight/bias).
    gamma = 1.0 + 0.1 * jax.random.normal(kg, (C,), dtype=jnp.float32)
    beta = 0.1 * jax.random.normal(kb, (C,), dtype=jnp.float32)
    running_mean = 0.1 * jax.random.normal(km, (C,), dtype=jnp.float32)
    running_var = jnp.abs(jax.random.normal(kv, (C,), dtype=jnp.float32)) + 0.5

    # nn.Linear(C*H, K) weight is (K, C*H); store transposed and reshaped to (C, H, K).
    lim = 1.0 / jnp.sqrt(jnp.float32(C * H))
    w_linear = jax.random.uniform(kw, (K, C * H), minval=-lim, maxval=lim, dtype=jnp.float32)
    bias = jax.random.uniform(kbias, (K,), minval=-lim, maxval=lim, dtype=jnp.float32)
    w_chk = w_linear.T.reshape(C, H, K)

    out = densemodule_forward(x, gamma, beta, running_mean, running_var, w_chk, bias)
    out = jax.block_until_ready(out)

    ref = _reference(x, gamma, beta, running_mean, running_var, w_chk, bias)
    assert out.shape == (N, K)
    assert jnp.allclose(out, ref, atol=1e-4, rtol=1e-4), "mismatch vs reference"

    print("KERNEL_OK")
</pallas_src>

<mosaic_0001>
module attributes {stable_mosaic.version = 11 : i64} {
  func.func @_dense_kernel(%arg0: i32, %arg1: memref<2x64x16xf32, #tpu.memory_space<vmem>>, %arg2: memref<64x128xf32, #tpu.memory_space<vmem>>, %arg3: memref<1x128xf32, #tpu.memory_space<vmem>>, %arg4: memref<2x128xf32, #tpu.memory_space<vmem>>) attributes {dimension_semantics = [#tpu.dimension_semantics<parallel>], iteration_bounds = array<i64: 1>, scalar_prefetch = 0 : i64, scratch_operands = 0 : i64, tpu.core_type = #tpu.core_type<tc>, window_params = [{transform_indices = @transform_0, window_bounds = array<i64: 2, 64, 16>}, {pipeline_mode = #tpu.pipeline_mode<synchronous>, transform_indices = @transform_1, window_bounds = array<i64: 64, 128>}, {pipeline_mode = #tpu.pipeline_mode<synchronous>, transform_indices = @transform_2, window_bounds = array<i64: 1, 128>}, {transform_indices = @transform_3, window_bounds = array<i64: 2, 128>}]} {
    %c0 = arith.constant 0 : index
    %c0_0 = arith.constant 0 : index
    %c0_1 = arith.constant 0 : index
    %0 = vector.load %arg1[%c0, %c0_0, %c0_1] : memref<2x64x16xf32, #tpu.memory_space<vmem>>, vector<2x64x16xf32>
    %cst = arith.constant dense<0.000000e+00> : vector<2x64xf32>
    %1 = vector.multi_reduction <add>, %0, %cst [2] : vector<2x64x16xf32> to vector<2x64xf32>
    %c0_2 = arith.constant 0 : index
    %c0_3 = arith.constant 0 : index
    %2 = vector.load %arg2[%c0_2, %c0_3] : memref<64x128xf32, #tpu.memory_space<vmem>>, vector<64x128xf32>
    %cst_4 = arith.constant dense<0.000000e+00> : vector<2x128xf32>
    %3 = tpu.matmul %1, %2, %cst_4 {dimension_numbers = #tpu.dot_dimension_numbers<[1], [0], [0], [1], [0, 0, 1, 1], [], []>} : vector<2x64xf32>, vector<64x128xf32>, vector<2x128xf32> -> vector<2x128xf32>
    %c0_5 = arith.constant 0 : index
    %c0_6 = arith.constant 0 : index
    %4 = vector.load %arg3[%c0_5, %c0_6] : memref<1x128xf32, #tpu.memory_space<vmem>>, vector<1x128xf32>
    %5 = vector.broadcast %4 : vector<1x128xf32> to vector<2x128xf32>
    %6 = arith.addf %3, %5 : vector<2x128xf32>
    %c0_7 = arith.constant 0 : index
    %c0_8 = arith.constant 0 : index
    %7 = vector.load %arg4[%c0_7, %c0_8] : memref<2x128xf32, #tpu.memory_space<vmem>>, vector<2x128xf32>
    tpu.vector_store %arg4[%c0_7, %c0_8], %6 {strides = array<i32>} : memref<2x128xf32, #tpu.memory_space<vmem>>, vector<2x128xf32>,
    return
  }
  func.func @transform_0(%arg0: i32) -> (i32, i32, i32) {
    %c0_i32 = arith.constant 0 : i32
    %c0_i32_0 = arith.constant 0 : i32
    %c0_i32_1 = arith.constant 0 : i32
    return %arg0, %c0_i32, %c0_i32_0 : i32, i32, i32
  }
  func.func @transform_1(%arg0: i32) -> (i32, i32) {
    %c0_i32 = arith.constant 0 : i32
    %c0_i32_0 = arith.constant 0 : i32
    %c0_i32_1 = arith.constant 0 : i32
    return %c0_i32, %c0_i32_0 : i32, i32
  }
  func.func @transform_2(%arg0: i32) -> (i32, i32) {
    %c0_i32 = arith.constant 0 : i32
    %c0_i32_0 = arith.constant 0 : i32
    %c0_i32_1 = arith.constant 0 : i32
    return %c0_i32, %c0_i32_0 : i32, i32
  }
  func.func @transform_3(%arg0: i32) -> (i32, i32) {
    %c0_i32 = arith.constant 0 : i32
    %c0_i32_0 = arith.constant 0 : i32
    return %arg0, %c0_i32 : i32, i32
  }
}

</mosaic_0001>

<bundles_post_ra>
// kernel: tpu_custom_call.1
= control target key start
LH: loop header
LB: loop body
LE: loop exit
PB: predicated region body
PF: predicated region fallthrough
CT: control target
= control target key end

     0   :  { %vm31_vm0 = vcmask 130048   ;;  %s477_s0 = inlined_call_operand.vmem [shape: f32[2,64,16], index: 0, kind: input, shape index: {}]   ;;  %s478_s1 = inlined_call_operand.vmem [shape: f32[64,128], index: 1, kind: input, shape index: {}]   ;;  %s479_s2 = inlined_call_operand.vmem [shape: f32[1,128], index: 2, kind: input, shape index: {}]   ;;  %s480_s3 = inlined_call_operand.hbm [shape: f32[2,128], index: 3, kind: output, shape index: {}]  }
   0x1   :  { %v23_v0 = vld [vmem:[%s477_s0 + $0x40] sm:$0xff]  ;;  %v24_v2 = vld [vmem:[%s477_s0 + $0x48] sm:$0xff]  ;;  %v25_v8 = vld [vmem:[%s477_s0 + $0x50] sm:$0xff] }
   0x2   :  { %v15_v1 = vld [vmem:[%s477_s0] sm:$0xff]  ;;  %v56_v3 = vsel %vm31_vm0, %v23_v0, 0.0  ;;  %v16_v5 = vld [vmem:[%s477_s0 + $0x8] sm:$0xff]  ;;  %v59_v6 = vsel %vm31_vm0, %v24_v2, 0.0  ;;  %v17_v9 = vld [vmem:[%s477_s0 + $0x10] sm:$0xff] }
   0x3   :  { %v32_v4 = vsel %vm31_vm0, %v15_v1, 0.0  ;;  %57 = vadd.xlane.f32.xlu1 %v56_v3  ;;  %v35_v7 = vsel %vm31_vm0, %v16_v5, 0.0 }
   0x4   :  { %33 = vadd.xlane.f32.xlu0 %v32_v4 }
   0x7   :  { %60 = vadd.xlane.f32.xlu1 %v59_v6 }
   0x8   :  { %36 = vadd.xlane.f32.xlu0 %v35_v7 }
   0x9   :  { %8 = vsyncpa [#allocation3], 0  ;;  %v62_v10 = vsel %vm31_vm0, %v25_v8, 0.0  ;;  %v38_v11 = vsel %vm31_vm0, %v17_v9, 0.0  ;;  %v26_v12 = vld [vmem:[%s477_s0 + $0x58] sm:$0xff]  ;;  %v27_v16 = vld [vmem:[%s477_s0 + $0x60] sm:$0xff]  ;;  %v111_v45 = vlaneseq }
   0xa   :  { %v18_v13 = vld [vmem:[%s477_s0 + $0x18] sm:$0xff]  ;;  %v65_v14 = vsel %vm31_vm0, %v26_v12, 0.0  ;;  %v19_v17 = vld [vmem:[%s477_s0 + $0x20] sm:$0xff]  ;;  %v68_v18 = vsel %vm31_vm0, %v27_v16, 0.0  ;;  %v28_v20 = vld [vmem:[%s477_s0 + $0x68] sm:$0xff]  ;;  %v350_v32 = vmov 0.0  }
   0xb   :  { %63 = vadd.xlane.f32.xlu1 %v62_v10  ;;  %v41_v15 = vsel %vm31_vm0, %v18_v13, 0.0  ;;  %v44_v19 = vsel %vm31_vm0, %v19_v17, 0.0  ;;  %v20_v21 = vld [vmem:[%s477_s0 + $0x28] sm:$0xff]  ;;  %v71_v22 = vsel %vm31_vm0, %v28_v20, 0.0  ;;  %v29_v24 = vld [vmem:[%s477_s0 + $0x70] sm:$0xff]  ;;  %v30_v28 = vld [vmem:[%s477_s0 + $0x78] sm:$0xff]  ;;  %306 = vmatprep.subr.mxu0 %v350_v32 }
   0xc   :  { %39 = vadd.xlane.f32.xlu0 %v38_v11  ;;  %v47_v23 = vsel %vm31_vm0, %v20_v21, 0.0  ;;  %v21_v25 = vld [vmem:[%s477_s0 + $0x30] sm:$0xff]  ;;  %v74_v26 = vsel %vm31_vm0, %v29_v24, 0.0  ;;  %v22_v29 = vld [vmem:[%s477_s0 + $0x38] sm:$0xff]  ;;  %v77_v30 = vsel %vm31_vm0, %v30_v28, 0.0  ;;  %v85_v35 = vld [vmem:[%s478_s1 + $0x28] sm:$0xff] }
   0xd   :  { %v50_v27 = vsel %vm31_vm0, %v21_v25, 0.0  ;;  %v53_v31 = vsel %vm31_vm0, %v22_v29, 0.0  ;;  %v87_v33 = vld [vmem:[%s478_s1 + $0x38] sm:$0xff]  ;;  %v86_v34 = vld [vmem:[%s478_s1 + $0x30] sm:$0xff]  ;;  %v84_v36 = vld [vmem:[%s478_s1 + $0x20] sm:$0xff]  ;;  %vm351_vm1 = vmmov 0  }
   0xe   :  { %307 = vmatpush3.msra.mxu0 %v87_v33  ;;  %v83_v37 = vld [vmem:[%s478_s1 + $0x18] sm:$0xff]  ;;  %v82_v38 = vld [vmem:[%s478_s1 + $0x10] sm:$0xff]  ;;  %v81_v39 = vld [vmem:[%s478_s1 + $0x8] sm:$0xff]  ;;  %322 = vmatprep.mubr.msk.f32.mxu0 %vm351_vm1, %v350_v32  ;;  %v112_v48 = vand.u32 127, %v111_v45  ;;  %v114_v53 = vshrl.u32 %v111_v45, 7  ;;  %vm122_vm2 = vcmask 130112  }
   0xf   :  { %66 = vadd.xlane.f32.xlu1 %v65_v14  ;;  %308 = vmatprep.subr.mxu0 %v350_v32  ;;  %v80_v40 = vld [vmem:[%s478_s1] sm:$0xff]  ;;  %vm129_vm3 = vcmask 195712   ;;  %vm136_vm4 = vcmask 261312   ;;  %vm143_vm5 = vcmask 326912   ;;  %vm150_vm6 = vcmask 392512   ;;  %s352_s6 = smov [#allocation2]  }
  0x10   :  { %42 = vadd.xlane.f32.xlu0 %v41_v15  ;;  %309 = vmatpush3.msra.mxu0 %v86_v34  ;;  %v117_v51 = vadd.s32 4294967288, %v112_v48  ;;  %v124_v52 = vadd.s32 4294967280, %v112_v48  ;;  %v131_v54 = vadd.s32 4294967272, %v112_v48  ;;  %v138_v55 = vadd.s32 4294967264, %v112_v48  ;;  %s287_s7 = sshll.u32 %s352_s6, 4  ;;  %s288_s7 = int_to_ptr.vmem [resolvable:$true] %s287_s7 }
  0x11   :  { %310 = vmatprep.subr.mxu0 %v350_v32  ;;  %v145_v59 = vadd.s32 4294967256, %v112_v48  ;;  %v152_v61 = vadd.s32 4294967248, %v112_v48  ;;  %v115_v62 = vsub.s32 %v112_v48, %v114_v53  ;;  %v159_v3 = vadd.s32 4294967240, %v112_v48  ;;  %s328_s8 = scalar_lea.vmem %s288_s7, 32  ;;  %p333_p1 = scmp.lt.s32.totalorder %s288_s7, %s288_s7 }
  0x12   :  { %311 = vmatpush3.msra.mxu0 %v85_v35  ;;  %v120_v58 = vsub.s32 %v117_v51, %v114_v53  ;;  %v127_v60 = vsub.s32 %v124_v52, %v114_v53  ;;  %v134_v63 = vsub.s32 %v131_v54, %v114_v53  ;;  %v141_v0 = vsub.s32 %v138_v55, %v114_v53  ;;  %p329_p0 = scmp.ne.s32.totalorder %s288_s7, %s328_s8  ;;  %p334_p2 = scmp.lt.s32.totalorder %s328_s8, %s328_s8 }
  0x13   :  { %69 = vadd.xlane.f32.xlu1 %v68_v18  ;;  %312 = vmatprep.subr.mxu0 %v350_v32  ;;  %v148_v6 = vsub.s32 %v145_v59, %v114_v53  ;;  %v155_v9 = vsub.s32 %v152_v61, %v114_v53  ;;  %v162_v18 = vsub.s32 %v159_v3, %v114_v53  ;;  %vm157_vm7 = vcmask 458112  }
  0x14   :  { %45 = vadd.xlane.f32.xlu0 %v44_v19  ;;  %313 = vmatpush3.msra.mxu0 %v84_v36  ;;  %vm164_vm8 = vcmask 523712   ;;  %vm205_vm9 = vcmask 1041409   ;;  %vm207_vm10 = vcmask 523264   ;;  %p335_p3 = por %p334_p2, %p333_p1 }
  0x15   :  { %314 = vmatprep.subr.mxu0 %v350_v32 }
  0x16   :  { %315 = vmatpush3.msra.mxu0 %v83_v37  ;;  %p336_p4 = pnand %p335_p3, %p329_p0 }
  0x17   :  { %72 = vadd.xlane.f32.xlu1 %v71_v22  ;;  %316 = vmatprep.subr.mxu0 %v350_v32 }
  0x18   :  { %48 = vadd.xlane.f32.xlu0 %v47_v23  ;;  %317 = vmatpush3.msra.mxu0 %v82_v38 }
  0x19   :  { %318 = vmatprep.subr.mxu0 %v350_v32 }
  0x1a   :  { %319 = vmatpush3.msra.mxu0 %v81_v39 }
  0x1b   :  { %75 = vadd.xlane.f32.xlu1 %v74_v26  ;;  %320 = vmatprep.subr.mxu0 %v350_v32 }
  0x1c   :  { %51 = vadd.xlane.f32.xlu0 %v50_v27  ;;  %321 = vmatpush3.msra.mxu0 %v80_v40 }
  0x1f   :  { %78 = vadd.xlane.f32.xlu1 %v77_v30 }
  0x20   :  { %54 = vadd.xlane.f32.xlu0 %v53_v31 }
  0x8c   :  { %v58_v41 = vpop.xlane.xlu1 %57 }
  0x8d   :  { %v34_v42 = vpop.xlane.xlu0 %33  ;;  %v169_v10 = vrot.slane %v58_v41, %v115_v62 }
  0x8e   :  { %v116_v11 = vrot.slane %v34_v42, %v115_v62  ;;  %v295_v42 = vld [vmem:[%s479_s2] ss:$0 sm:$0xff] }
  0x90   :  { %v61_v43 = vpop.xlane.xlu1 %60 }
  0x91   :  { %v37_v44 = vpop.xlane.xlu0 %36  ;;  %v173_v4 = vrot.slane %v61_v43, %v120_v58 }
  0x92   :  { %v121_v5 = vrot.slane %v37_v44, %v120_v58 }
  0x93   :  { %v174_v19 = vsel %vm122_vm2, %v173_v4, %v169_v10 }
  0x94   :  { %v64_v46 = vpop.xlane.xlu1 %63  ;;  %v123_v20 = vsel %vm122_vm2, %v121_v5, %v116_v11 }
  0x95   :  { %v40_v47 = vpop.xlane.xlu0 %39  ;;  %v178_v7 = vrot.slane %v64_v46, %v127_v60 }
  0x96   :  { %v128_v8 = vrot.slane %v40_v47, %v127_v60 }
  0x97   :  { %v179_v23 = vsel %vm129_vm3, %v178_v7, %v174_v19 }
  0x98   :  { %v67_v49 = vpop.xlane.xlu1 %66  ;;  %v130_v24 = vsel %vm129_vm3, %v128_v8, %v123_v20 }
  0x99   :  { %v43_v50 = vpop.xlane.xlu0 %42  ;;  %v183_v12 = vrot.slane %v67_v49, %v134_v63 }
  0x9a   :  { %v135_v13 = vrot.slane %v43_v50, %v134_v63 }
  0x9b   :  { %v184_v27 = vsel %vm136_vm4, %v183_v12, %v179_v23 }
  0x9c   :  { %v70_v56 = vpop.xlane.xlu1 %69  ;;  %v137_v28 = vsel %vm136_vm4, %v135_v13, %v130_v24 }
  0x9d   :  { %v46_v57 = vpop.xlane.xlu0 %45  ;;  %v188_v14 = vrot.slane %v70_v56, %v141_v0 }
  0x9e   :  { %v142_v15 = vrot.slane %v46_v57, %v141_v0 }
  0x9f   :  { %v189_v29 = vsel %vm143_vm5, %v188_v14, %v184_v27 }
  0xa0   :  { %v73_v1 = vpop.xlane.xlu1 %72  ;;  %v144_v30 = vsel %vm143_vm5, %v142_v15, %v137_v28 }
  0xa1   :  { %v49_v2 = vpop.xlane.xlu0 %48  ;;  %v193_v21 = vrot.slane %v73_v1, %v148_v6 }
  0xa2   :  { %v149_v22 = vrot.slane %v49_v2, %v148_v6 }
  0xa3   :  { %v194_v33 = vsel %vm150_vm6, %v193_v21, %v189_v29 }
  0xa4   :  { %v76_v16 = vpop.xlane.xlu1 %75  ;;  %v151_v34 = vsel %vm150_vm6, %v149_v22, %v144_v30 }
  0xa5   :  { %v52_v17 = vpop.xlane.xlu0 %51  ;;  %v198_v25 = vrot.slane %v76_v16, %v155_v9 }
  0xa6   :  { %v156_v26 = vrot.slane %v52_v17, %v155_v9 }
  0xa7   :  { %v199_v37 = vsel %vm157_vm7, %v198_v25, %v194_v33 }
  0xa8   :  { %v79_v31 = vpop.xlane.xlu1 %78  ;;  %v158_v38 = vsel %vm157_vm7, %v156_v26, %v151_v34 }
  0xa9   :  { %v55_v32 = vpop.xlane.xlu0 %54  ;;  %v203_v35 = vrot.slane %v79_v31, %v162_v18 }
  0xaa   :  { %v163_v36 = vrot.slane %v55_v32, %v162_v18 }
  0xab   :  { %v204_v39 = vsel %vm164_vm8, %v203_v35, %v199_v37 }
  0xac   :  { %v165_v40 = vsel %vm164_vm8, %v163_v36, %v158_v38 }
  0xad   :  { %v206_v41 = vsel %vm205_vm9, %v204_v39, %v165_v40 }
  0xae   :  { %323 = vmatmul.mubr.msk.f32.vlgmr.msra.gmra.mxu0 %vm207_vm10, %v206_v41 }
 0x16e   :  { %v276_v43 = vpop.f32.mrf.mxu0 }
 0x16f   :  { %v277_v44 = vadd.f32 %v295_v42, %v276_v43 }
 0x170   :  { %v324_v45 = vpop.f32.mrf.mxu0 }
 0x171   :  { %280 = vst [vmem:[#allocation2] sm:$0x3] %v277_v44 }
 0x172   :  { %339 = shalt.err (!%p336_p4)
}
 0x173   :  { %290 = dma.vmem_to_hbm [thread:$0]  %s288_s7, 32, %s480_s3, [#allocation3]  }
 0x174   :  { %348 = dma.done.wait [#allocation3], 32  }
 0x175   :  { %349 = vsyncadd [#allocation3], 4294967264 }
 0x176   :  { %294 = vsyncpa [#allocation3], 1 }

</bundles_post_ra>
